<compile_context>
chip_gen: v5e
topology: v5e:2x2
jax: 0.10.0
libtpu: 0.0.40
codegen_flags: <defaults>
</compile_context>

<pallas_src>
import functools

import jax
import jax.numpy as jnp
from jax.experimental import pallas as pl
from jax.experimental.pallas import tpu as pltpu

HIDDEN = 100   # fixed by the module definition
LANE = 128     # TPU lane width


def _round_up(x, m):
    return (x + m - 1) // m * m


def _cdiv(a, b):
    return (a + b - 1) // b


def _mlp_kernel(x_ref, w1_ref, w2_ref, w3_ref, w4_ref, w5_ref, b_ref, out_ref,
                *, out_dim):
    """One batch tile of the 5-layer MLP forward.

    x_ref:  (tb, in_dim)  f32   (unpadded feature dim)
    w1_ref: (in_dim, 128) bf16  (N zero-padded)
    w2..w5: (128, 128)    bf16  (K/N zero-padded)
    b_ref:  (8, 128)      f32   (rows 0..4 = b1..b5, zero-padded)
    out_ref:(tb, out_dim) f32
    """
    in_dim = w1_ref.shape[0]
    tb = x_ref.shape[0]
    hid = w1_ref.shape[1]

    # ---- Layer 1 -----------------------------------------------------------
    if in_dim <= 16:
        # K is tiny: do in_dim rank-1 broadcast-FMAs on the VPU in f32
        # (an MXU pass would be ~97% wasted and this always lowers cleanly).
        x = x_ref[...]                                  # (tb, in_dim) f32
        w1 = w1_ref[...].astype(jnp.float32)            # (in_dim, hid)
        h = b_ref[0:1, :] + x[:, 0:1] * w1[0:1, :]      # (tb, hid)
        for k in range(1, in_dim):
            h = h + x[:, k:k + 1] * w1[k:k + 1, :]
    else:
        h = jnp.dot(x_ref[...].astype(jnp.bfloat16), w1_ref[...],
                    preferred_element_type=jnp.float32) + b_ref[0:1, :]
    h = jnp.maximum(h, 0.0).astype(jnp.bfloat16)

    # ---- Layers 2-4 (bf16 MXU, f32 accumulate) -----------------------------
    h = jnp.dot(h, w2_ref[...], preferred_element_type=jnp.float32) + b_ref[1:2, :]
    h = jnp.maximum(h, 0.0).astype(jnp.bfloat16)
    h = jnp.dot(h, w3_ref[...], preferred_element_type=jnp.float32) + b_ref[2:3, :]
    h = jnp.maximum(h, 0.0).astype(jnp.bfloat16)
    h = jnp.dot(h, w4_ref[...], preferred_element_type=jnp.float32) + b_ref[3:4, :]
    h = jnp.maximum(h, 0.0).astype(jnp.bfloat16)

    # ---- Output layer: full-tile dot, then store only the real columns -----
    y = jnp.dot(h, w5_ref[...], preferred_element_type=jnp.float32) + b_ref[4:5, :]
    out_ref[...] = y[:, :out_dim].astype(out_ref.dtype)

    del tb, hid  # (shapes only used implicitly)


@functools.partial(jax.jit, static_argnames=("out_dim", "tb"))
def network_forward(x, padded_params, out_dim, tb=1024):
    """x: [B, input_dim] f32. padded_params from pad_params(). -> [B, out_dim] f32."""
    B, in_dim = x.shape
    assert padded_params["w1"].shape[0] == in_dim

    # Batch tiling: at least 2 grid steps when B allows (so the "parallel"
    # batch axis can shard across both TensorCores on v7x); tile is a multiple
    # of 8 sublanes; over-padding bounded to <8 rows per tile.
    num_tiles = max(2, _cdiv(B, tb))
    tb_eff = _round_up(_cdiv(B, num_tiles), 8)
    b_pad = _round_up(B, tb_eff)
    grid = (b_pad // tb_eff,)

    x = x.astype(jnp.float32)
    if b_pad != B:
        x = jnp.pad(x, ((0, b_pad - B), (0, 0)))

    weights = (padded_params["w1"], padded_params["w2"], padded_params["w3"],
               padded_params["w4"], padded_params["w5"])
    biases = padded_params["bias"]
    hid_pad = weights[1].shape[1]
    out_pad = weights[4].shape[1]

    const_map = lambda i: (0, 0)
    in_specs = ([pl.BlockSpec((tb_eff, in_dim), lambda i: (i, 0))]
                + [pl.BlockSpec(w.shape, const_map) for w in weights]
                + [pl.BlockSpec(biases.shape, const_map)])
    out_spec = pl.BlockSpec((tb_eff, out_dim), lambda i: (i, 0))

    flops = 2 * b_pad * (in_dim * hid_pad + 3 * hid_pad * hid_pad + hid_pad * out_pad)
    bytes_accessed = (4 * b_pad * (in_dim + out_dim)
                      + 2 * sum(int(w.size) for w in weights)
                      + 4 * int(biases.size))
    cost = pl.CostEstimate(flops=flops, transcendentals=0,
                           bytes_accessed=bytes_accessed)

    out = pl.pallas_call(
        functools.partial(_mlp_kernel, out_dim=out_dim),
        out_shape=jax.ShapeDtypeStruct((b_pad, out_dim), jnp.float32),
        grid=grid,
        in_specs=in_specs,
        out_specs=out_spec,
        compiler_params=pltpu.CompilerParams(
            dimension_semantics=("parallel",)),
        cost_estimate=cost,
    )(x, *weights, biases)

    return out[:B] if b_pad != B else out


def init_params(key, input_dimension, output_dimension):
    """Unpadded f32 params mimicking torch.nn.Linear default init.

    Weights stored transposed as [in, out] so each layer is y = x @ W + b.
    """
    dims = [input_dimension, HIDDEN, HIDDEN, HIDDEN, HIDDEN, output_dimension]
    params = {}
    for i in range(5):
        fan_in, fan_out = dims[i], dims[i + 1]
        key, kw, kb = jax.random.split(key, 3)
        bound = 1.0 / jnp.sqrt(jnp.float32(fan_in))
        params[f"w{i+1}"] = jax.random.uniform(
            kw, (fan_in, fan_out), jnp.float32, -bound, bound)
        params[f"b{i+1}"] = jax.random.uniform(
            kb, (1, fan_out), jnp.float32, -bound, bound)
    return params


def pad_params(params):
    """Prepare kernel operands.

    w1:        (in_dim, 128) bf16  -- K kept unpadded (streamed input is (tb, in_dim))
    w2..w5:    (128, 128)    bf16  -- zero-padded K/N
    bias:      (8, 128)      f32   -- rows 0..4 hold b1..b5 (zero-padded)
    Zero-padded weight columns + zero bias keep padded lanes exactly zero
    through ReLU, so real outputs equal the unpadded computation.
    """
    hid_pad = _round_up(HIDDEN, LANE)
    padded = {}
    for i in range(1, 6):
        w = params[f"w{i}"]
        k, n = w.shape
        assert n <= hid_pad and (i == 1 or k <= hid_pad), \
            "feature dims must fit within a single 128-lane tile"
        k_p = k if i == 1 else hid_pad
        padded[f"w{i}"] = (jnp.zeros((k_p, hid_pad), jnp.bfloat16)
                           .at[:k, :n].set(w.astype(jnp.bfloat16)))
    bias = jnp.zeros((8, hid_pad), jnp.float32)
    for i in range(1, 6):
        b = params[f"b{i}"].reshape(-1)
        bias = bias.at[i - 1, :b.shape[0]].set(b.astype(jnp.float32))
    padded["bias"] = bias
    return padded


def reference_forward_f32(x, params):
    h = x
    for i in range(1, 5):
        h = jnp.maximum(h @ params[f"w{i}"] + params[f"b{i}"], 0.0)
    return h @ params["w5"] + params["b5"]


def reference_forward_mixed(x, params):
    """Mimics the kernel's precision: layer 1 in f32 with bf16-rounded weights,
    layers 2-5 as bf16 matmuls with f32 accumulation."""
    w1 = params["w1"].astype(jnp.bfloat16).astype(jnp.float32)
    h = x.astype(jnp.float32) @ w1 + params["b1"]
    h = jnp.maximum(h, 0.0)
    for i in range(2, 6):
        w = params[f"w{i}"].astype(jnp.bfloat16)
        h = jnp.dot(h.astype(jnp.bfloat16), w,
                    preferred_element_type=jnp.float32) + params[f"b{i}"]
        if i < 5:
            h = jnp.maximum(h, 0.0)
    return h


if __name__ == "__main__":
    key = jax.random.PRNGKey(0)
    input_dimension = 4
    output_dimension = 2
    batch = 32

    kx, kp = jax.random.split(key)
    x = jax.random.normal(kx, (batch, input_dimension), jnp.float32)
    params = init_params(kp, input_dimension, output_dimension)
    padded = pad_params(params)

    out = network_forward(x, padded, out_dim=output_dimension)
    out = jax.block_until_ready(out)
    assert out.shape == (batch, output_dimension)

    # Tight check against a reference with the same bf16/f32-accumulate
    # precision as the kernel, looser check against the pure-f32 reference
    # (the bf16 cast is a deliberate precision trade-off per the perf review).
    ref_mixed = reference_forward_mixed(x, params)
    ref_f32 = reference_forward_f32(x, params)
    assert jnp.allclose(out, ref_mixed, atol=2e-3, rtol=2e-3)
    assert jnp.allclose(out, ref_f32, atol=5e-2, rtol=5e-2)

    print("KERNEL_OK")
</pallas_src>

<mosaic_0001>
module attributes {stable_mosaic.version = 11 : i64} {
  func.func @_mlp_kernel(%arg0: i32, %arg1: memref<16x4xf32, #tpu.memory_space<vmem>>, %arg2: memref<4x128xbf16, #tpu.memory_space<vmem>>, %arg3: memref<128x128xbf16, #tpu.memory_space<vmem>>, %arg4: memref<128x128xbf16, #tpu.memory_space<vmem>>, %arg5: memref<128x128xbf16, #tpu.memory_space<vmem>>, %arg6: memref<128x128xbf16, #tpu.memory_space<vmem>>, %arg7: memref<8x128xf32, #tpu.memory_space<vmem>>, %arg8: memref<16x2xf32, #tpu.memory_space<vmem>>) attributes {dimension_semantics = [#tpu.dimension_semantics<parallel>], iteration_bounds = array<i64: 2>, scalar_prefetch = 0 : i64, scratch_operands = 0 : i64, tpu.core_type = #tpu.core_type<tc>, window_params = [{transform_indices = @transform_0, window_bounds = array<i64: 16, 4>}, {pipeline_mode = #tpu.pipeline_mode<synchronous>, transform_indices = @transform_1, window_bounds = array<i64: 4, 128>}, {pipeline_mode = #tpu.pipeline_mode<synchronous>, transform_indices = @transform_2, window_bounds = array<i64: 128, 128>}, {pipeline_mode = #tpu.pipeline_mode<synchronous>, transform_indices = @transform_3, window_bounds = array<i64: 128, 128>}, {pipeline_mode = #tpu.pipeline_mode<synchronous>, transform_indices = @transform_4, window_bounds = array<i64: 128, 128>}, {pipeline_mode = #tpu.pipeline_mode<synchronous>, transform_indices = @transform_5, window_bounds = array<i64: 128, 128>}, {pipeline_mode = #tpu.pipeline_mode<synchronous>, transform_indices = @transform_6, window_bounds = array<i64: 8, 128>}, {transform_indices = @transform_7, window_bounds = array<i64: 16, 2>}]} {
    %c0 = arith.constant 0 : index
    %c0_0 = arith.constant 0 : index
    %0 = vector.load %arg1[%c0, %c0_0] : memref<16x4xf32, #tpu.memory_space<vmem>>, vector<16x4xf32>
    %c0_1 = arith.constant 0 : index
    %c0_2 = arith.constant 0 : index
    %1 = vector.load %arg2[%c0_1, %c0_2] : memref<4x128xbf16, #tpu.memory_space<vmem>>, vector<4x128xbf16>
    %2 = arith.extf %1 : vector<4x128xbf16> to vector<4x128xf32>
    %c0_3 = arith.constant 0 : index
    %c0_4 = arith.constant 0 : index
    %3 = vector.load %arg7[%c0_3, %c0_4] : memref<8x128xf32, #tpu.memory_space<vmem>>, vector<1x128xf32>
    %4 = vector.extract_strided_slice %0 {offsets = [0, 0], sizes = [16, 1], strides = [1, 1]} : vector<16x4xf32> to vector<16x1xf32>
    %5 = vector.extract_strided_slice %2 {offsets = [0, 0], sizes = [1, 128], strides = [1, 1]} : vector<4x128xf32> to vector<1x128xf32>
    %6 = vector.broadcast %4 : vector<16x1xf32> to vector<16x128xf32>
    %7 = vector.broadcast %5 : vector<1x128xf32> to vector<16x128xf32>
    %8 = arith.mulf %6, %7 : vector<16x128xf32>
    %9 = vector.broadcast %3 : vector<1x128xf32> to vector<16x128xf32>
    %10 = arith.addf %9, %8 : vector<16x128xf32>
    %11 = vector.extract_strided_slice %0 {offsets = [0, 1], sizes = [16, 1], strides = [1, 1]} : vector<16x4xf32> to vector<16x1xf32>
    %12 = vector.extract_strided_slice %2 {offsets = [1, 0], sizes = [1, 128], strides = [1, 1]} : vector<4x128xf32> to vector<1x128xf32>
    %13 = vector.broadcast %11 : vector<16x1xf32> to vector<16x128xf32>
    %14 = vector.broadcast %12 : vector<1x128xf32> to vector<16x128xf32>
    %15 = arith.mulf %13, %14 : vector<16x128xf32>
    %16 = arith.addf %10, %15 : vector<16x128xf32>
    %17 = vector.extract_strided_slice %0 {offsets = [0, 2], sizes = [16, 1], strides = [1, 1]} : vector<16x4xf32> to vector<16x1xf32>
    %18 = vector.extract_strided_slice %2 {offsets = [2, 0], sizes = [1, 128], strides = [1, 1]} : vector<4x128xf32> to vector<1x128xf32>
    %19 = vector.broadcast %17 : vector<16x1xf32> to vector<16x128xf32>
    %20 = vector.broadcast %18 : vector<1x128xf32> to vector<16x128xf32>
    %21 = arith.mulf %19, %20 : vector<16x128xf32>
    %22 = arith.addf %16, %21 : vector<16x128xf32>
    %23 = vector.extract_strided_slice %0 {offsets = [0, 3], sizes = [16, 1], strides = [1, 1]} : vector<16x4xf32> to vector<16x1xf32>
    %24 = vector.extract_strided_slice %2 {offsets = [3, 0], sizes = [1, 128], strides = [1, 1]} : vector<4x128xf32> to vector<1x128xf32>
    %25 = vector.broadcast %23 : vector<16x1xf32> to vector<16x128xf32>
    %26 = vector.broadcast %24 : vector<1x128xf32> to vector<16x128xf32>
    %27 = arith.mulf %25, %26 : vector<16x128xf32>
    %28 = arith.addf %22, %27 : vector<16x128xf32>
    %cst = arith.constant 0.000000e+00 : f32
    %29 = vector.broadcast %cst : f32 to vector<16x128xf32>
    %30 = arith.maximumf %28, %29 : vector<16x128xf32>
    %31 = arith.truncf %30 : vector<16x128xf32> to vector<16x128xbf16>
    %c0_5 = arith.constant 0 : index
    %c0_6 = arith.constant 0 : index
    %32 = vector.load %arg3[%c0_5, %c0_6] : memref<128x128xbf16, #tpu.memory_space<vmem>>, vector<128x128xbf16>
    %cst_7 = arith.constant dense<0.000000e+00> : vector<16x128xf32>
    %33 = tpu.matmul %31, %32, %cst_7 {dimension_numbers = #tpu.dot_dimension_numbers<[1], [0], [0], [1], [0, 0, 1, 1], [], []>} : vector<16x128xbf16>, vector<128x128xbf16>, vector<16x128xf32> -> vector<16x128xf32>
    %c1 = arith.constant 1 : index
    %c0_8 = arith.constant 0 : index
    %34 = vector.load %arg7[%c1, %c0_8] : memref<8x128xf32, #tpu.memory_space<vmem>>, vector<1x128xf32>
    %35 = vector.broadcast %34 : vector<1x128xf32> to vector<16x128xf32>
    %36 = arith.addf %33, %35 : vector<16x128xf32>
    %cst_9 = arith.constant 0.000000e+00 : f32
    %37 = vector.broadcast %cst_9 : f32 to vector<16x128xf32>
    %38 = arith.maximumf %36, %37 : vector<16x128xf32>
    %39 = arith.truncf %38 : vector<16x128xf32> to vector<16x128xbf16>
    %c0_10 = arith.constant 0 : index
    %c0_11 = arith.constant 0 : index
    %40 = vector.load %arg4[%c0_10, %c0_11] : memref<128x128xbf16, #tpu.memory_space<vmem>>, vector<128x128xbf16>
    %cst_12 = arith.constant dense<0.000000e+00> : vector<16x128xf32>
    %41 = tpu.matmul %39, %40, %cst_12 {dimension_numbers = #tpu.dot_dimension_numbers<[1], [0], [0], [1], [0, 0, 1, 1], [], []>} : vector<16x128xbf16>, vector<128x128xbf16>, vector<16x128xf32> -> vector<16x128xf32>
    %c2 = arith.constant 2 : index
    %c0_13 = arith.constant 0 : index
    %42 = vector.load %arg7[%c2, %c0_13] : memref<8x128xf32, #tpu.memory_space<vmem>>, vector<1x128xf32>
    %43 = vector.broadcast %42 : vector<1x128xf32> to vector<16x128xf32>
    %44 = arith.addf %41, %43 : vector<16x128xf32>
    %cst_14 = arith.constant 0.000000e+00 : f32
    %45 = vector.broadcast %cst_14 : f32 to vector<16x128xf32>
    %46 = arith.maximumf %44, %45 : vector<16x128xf32>
    %47 = arith.truncf %46 : vector<16x128xf32> to vector<16x128xbf16>
    %c0_15 = arith.constant 0 : index
    %c0_16 = arith.constant 0 : index
    %48 = vector.load %arg5[%c0_15, %c0_16] : memref<128x128xbf16, #tpu.memory_space<vmem>>, vector<128x128xbf16>
    %cst_17 = arith.constant dense<0.000000e+00> : vector<16x128xf32>
    %49 = tpu.matmul %47, %48, %cst_17 {dimension_numbers = #tpu.dot_dimension_numbers<[1], [0], [0], [1], [0, 0, 1, 1], [], []>} : vector<16x128xbf16>, vector<128x128xbf16>, vector<16x128xf32> -> vector<16x128xf32>
    %c3 = arith.constant 3 : index
    %c0_18 = arith.constant 0 : index
    %50 = vector.load %arg7[%c3, %c0_18] : memref<8x128xf32, #tpu.memory_space<vmem>>, vector<1x128xf32>
    %51 = vector.broadcast %50 : vector<1x128xf32> to vector<16x128xf32>
    %52 = arith.addf %49, %51 : vector<16x128xf32>
    %cst_19 = arith.constant 0.000000e+00 : f32
    %53 = vector.broadcast %cst_19 : f32 to vector<16x128xf32>
    %54 = arith.maximumf %52, %53 : vector<16x128xf32>
    %55 = arith.truncf %54 : vector<16x128xf32> to vector<16x128xbf16>
    %c0_20 = arith.constant 0 : index
    %c0_21 = arith.constant 0 : index
    %56 = vector.load %arg6[%c0_20, %c0_21] : memref<128x128xbf16, #tpu.memory_space<vmem>>, vector<128x128xbf16>
    %cst_22 = arith.constant dense<0.000000e+00> : vector<16x128xf32>
    %57 = tpu.matmul %55, %56, %cst_22 {dimension_numbers = #tpu.dot_dimension_numbers<[1], [0], [0], [1], [0, 0, 1, 1], [], []>} : vector<16x128xbf16>, vector<128x128xbf16>, vector<16x128xf32> -> vector<16x128xf32>
    %c4 = arith.constant 4 : index
    %c0_23 = arith.constant 0 : index
    %58 = vector.load %arg7[%c4, %c0_23] : memref<8x128xf32, #tpu.memory_space<vmem>>, vector<1x128xf32>
    %59 = vector.broadcast %58 : vector<1x128xf32> to vector<16x128xf32>
    %60 = arith.addf %57, %59 : vector<16x128xf32>
    %61 = vector.extract_strided_slice %60 {offsets = [0, 0], sizes = [16, 2], strides = [1, 1]} : vector<16x128xf32> to vector<16x2xf32>
    %c0_24 = arith.constant 0 : index
    %c0_25 = arith.constant 0 : index
    %62 = vector.load %arg8[%c0_24, %c0_25] : memref<16x2xf32, #tpu.memory_space<vmem>>, vector<16x2xf32>
    tpu.vector_store %arg8[%c0_24, %c0_25], %61 {strides = array<i32>} : memref<16x2xf32, #tpu.memory_space<vmem>>, vector<16x2xf32>,
    return
  }
  func.func @transform_0(%arg0: i32) -> (i32, i32) {
    %c0_i32 = arith.constant 0 : i32
    %c0_i32_0 = arith.constant 0 : i32
    return %arg0, %c0_i32 : i32, i32
  }
  func.func @transform_1(%arg0: i32) -> (i32, i32) {
    %c0_i32 = arith.constant 0 : i32
    %c0_i32_0 = arith.constant 0 : i32
    %c0_i32_1 = arith.constant 0 : i32
    return %c0_i32, %c0_i32_0 : i32, i32
  }
  func.func @transform_2(%arg0: i32) -> (i32, i32) {
    %c0_i32 = arith.constant 0 : i32
    %c0_i32_0 = arith.constant 0 : i32
    %c0_i32_1 = arith.constant 0 : i32
    return %c0_i32, %c0_i32_0 : i32, i32
  }
  func.func @transform_3(%arg0: i32) -> (i32, i32) {
    %c0_i32 = arith.constant 0 : i32
    %c0_i32_0 = arith.constant 0 : i32
    %c0_i32_1 = arith.constant 0 : i32
    return %c0_i32, %c0_i32_0 : i32, i32
  }
  func.func @transform_4(%arg0: i32) -> (i32, i32) {
    %c0_i32 = arith.constant 0 : i32
    %c0_i32_0 = arith.constant 0 : i32
    %c0_i32_1 = arith.constant 0 : i32
    return %c0_i32, %c0_i32_0 : i32, i32
  }
  func.func @transform_5(%arg0: i32) -> (i32, i32) {
    %c0_i32 = arith.constant 0 : i32
    %c0_i32_0 = arith.constant 0 : i32
    %c0_i32_1 = arith.constant 0 : i32
    return %c0_i32, %c0_i32_0 : i32, i32
  }
  func.func @transform_6(%arg0: i32) -> (i32, i32) {
    %c0_i32 = arith.constant 0 : i32
    %c0_i32_0 = arith.constant 0 : i32
    %c0_i32_1 = arith.constant 0 : i32
    return %c0_i32, %c0_i32_0 : i32, i32
  }
  func.func @transform_7(%arg0: i32) -> (i32, i32) {
    %c0_i32 = arith.constant 0 : i32
    %c0_i32_0 = arith.constant 0 : i32
    return %arg0, %c0_i32 : i32, i32
  }
}

</mosaic_0001>

<bundles_post_ra>
// kernel: network_forward.1
= control target key start
LH: loop header
LB: loop body
LE: loop exit
PB: predicated region body
PF: predicated region fallthrough
CT: control target
= control target key end

     0   :  { %12 = vsyncpa [#allocation3], 0  ;;  %s1371_s0 = inlined_call_operand.vmem [shape: f32[32,4], index: 0, kind: input, shape index: {}]   ;;  %s1372_s1 = inlined_call_operand.vmem [shape: bf16[4,128], index: 1, kind: input, shape index: {}]   ;;  %s1373_s2 = inlined_call_operand.hbm [shape: bf16[128,128], index: 2, kind: input, shape index: {}]   ;;  %s1374_s3 = inlined_call_operand.hbm [shape: bf16[128,128], index: 3, kind: input, shape index: {}]   ;;  %s1375_s4 = inlined_call_operand.hbm [shape: bf16[128,128], index: 4, kind: input, shape index: {}]   ;;  %s1376_s5 = inlined_call_operand.hbm [shape: bf16[128,128], index: 5, kind: input, shape index: {}]   ;;  %s1377_s6 = inlined_call_operand.vmem [shape: f32[8,128], index: 6, kind: input, shape index: {}]   ;;  %s1378_s7 = inlined_call_operand.vmem [shape: f32[32,2], index: 7, kind: output, shape index: {}]  }
   0x1   :  { %13 = vsyncpa [#allocation5], 0 }
   0x2   :  { %14 = vsyncpa [#allocation8], 0  ;;  %s1275_s24 = smov 0  }
   0x3 LB: > { %s841_s25 = sadd.s32 4294967295, %s1223_s24   ;;  %p843_p0 = scmp.ge.s32.totalorder %s1223_s24, 1  ;;  %s1223_s24 = sphi %s1275_s24, %s20_s24  }
   0x4   : > { %p203_p1 = scmp.lt.s32.totalorder %s1223_s24, 3  ;;  %p1285_p2 = scmp.eq.s32.totalorder %s841_s25, 0 }
   0x5   : > { %s231_s29 = sshll.u32 %s1374_s3, 4  ;;  %s217_s10 = sshll.u32 %s1373_s2, 4  ;;  %s232_s29 = int_to_ptr.hbm [resolvable:$true] %s231_s29  ;;  %s218_s10 = int_to_ptr.hbm [resolvable:$true] %s217_s10 }
   0x6   : > { %p1292_p3 = pnand %p843_p0, %p203_p1  ;;  %s1225_s11 = smov [#allocation4]  }
   0x7   : > { %s233_s12 = sshll.u32 %s1225_s11, 4  ;;  %s1226_s14 = smov [#allocation2]   ;;  %s234_s12 = int_to_ptr.vmem [resolvable:$true] %s233_s12 }
   0x8   : > { %p1036_p4 = pneg %p1292_p3  ;;  %s219_s15 = sshll.u32 %s1226_s14, 4  ;;  %s220_s15 = int_to_ptr.vmem [resolvable:$true] %s219_s15 }
   0x9   : > { %s245_s18 = sshll.u32 %s1375_s4, 4  ;;  %s1227_s19 = smov 64   ;;  %s246_s18 = int_to_ptr.hbm [resolvable:$true] %s245_s18 }
   0xa   : > { %p1303_p5 = pnand %p1285_p2, %p1036_p4  ;;  %s1228_s20 = smov 4  }
   0xb   : > { %s1229_s21 = smov [#allocation6]   ;;  %s259_s28 = sshll.u32 %s1376_s5, 4  ;;  %s260_s28 = int_to_ptr.hbm [resolvable:$true] %s259_s28 }
   0xc   : > { %1042 = dma.hbm_to_vmem [thread:$0]  (!%p1303_p5), %s232_s29, 1024, %s234_s12, [#allocation5], %s1227_s19, %s1227_s19, %s1228_s20  }
   0xd   : > { %1039 = dma.hbm_to_vmem [thread:$0]  (!%p1303_p5), %s218_s10, 1024, %s220_s15, [#allocation3], %s1227_s19, %s1227_s19, %s1228_s20  }
   0xe   : > { %s247_s22 = sshll.u32 %s1229_s21, 4  ;;  %s1230_s8 = smov [#allocation7]   ;;  %s248_s22 = int_to_ptr.vmem [resolvable:$true] %s247_s22 }
   0xf   : > { %1045 = dma.hbm_to_vmem [thread:$0]  (!%p1303_p5), %s246_s18, 1024, %s248_s22, [#allocation5], %s1227_s19, %s1227_s19, %s1228_s20  }
  0x10   : > { %s261_s9 = sshll.u32 %s1230_s8, 4  ;;  %289 = sbr.rel (%p1292_p3) target bundleno = 742 (0x2e6), region = 48  ;;  %s262_s9 = int_to_ptr.vmem [resolvable:$true] %s261_s9 }
  0x11   : > { %1048 = dma.hbm_to_vmem [thread:$0]  (!%p1303_p5), %s260_s28, 1024, %s262_s9, [#allocation8], %s1227_s19, %s1227_s19, %s1228_s20  }
  0x15   : > { %1210 = dma.done.wait (%p1285_p2), [#allocation3], 1024  }
  0x16   : > { %1212 = vsyncadd (%p1285_p2), [#allocation3], 4294966272 }
  0x17   : > { %1214 = dma.done.wait (%p1285_p2), [#allocation5], 2048  }
  0x18   : > { %1216 = vsyncadd (%p1285_p2), [#allocation5], 4294965248 }
  0x19   : > { %1218 = dma.done.wait (%p1285_p2), [#allocation8], 1024  }
  0x1a   : > { %1220 = vsyncadd (%p1285_p2), [#allocation8], 4294966272  ;;  %s854_s29 = sshll.u32 %s841_s25, 1  ;;  %v1231_v0 = vmov 1   ;;  %v1232_v1 = vmov 0   ;;  %v1233_v2 = vmov 2  }
  0x1b   : > { %1076 = vset.pattern.permute.xlu1 %v1231_v0  ;;  %1075 = vset.pattern.permute.xlu0 %v1232_v1  ;;  %p338_p6 = scmp.lt.s32.totalorder %s854_s29, 3  ;;  %v995_v4 = vld [vmem:[#allocation2 + $0x38] sm:$0xff]  ;;  %v994_v5 = vld [vmem:[#allocation2 + $0x30] sm:$0xff]  ;;  %v1234_v7 = vmov 3   ;;  %v993_v8 = vld [vmem:[#allocation2 + $0x28] sm:$0xff]  ;;  %vm741_vm0 = vcmask 15360  }
  0x1c   : > { %1077 = vset.pattern.permute.xlu2 %v1233_v2  ;;  %478 = vmatpush.bf16.msra.mxu0 %v995_v4  ;;  %v992_v9 = vld [vmem:[#allocation2 + $0x20] sm:$0xff]  ;;  %v991_v10 = vld [vmem:[#allocation2 + $0x18] sm:$0xff]  ;;  %v990_v11 = vld [vmem:[#allocation2 + $0x10] sm:$0xff] }
  0x1d   : > { %s1383_s29 = smov (!%p338_p6, %s854_s29), 3  ;;  %v989_v12 = vld [vmem:[#allocation2 + $0x8] sm:$0xff]  ;;  %v988_v13 = vld [vmem:[#allocation2] sm:$0xff]  ;;  %v1003_v14 = vld [vmem:[#allocation4 + $0x38] sm:$0xff] }
  0x1e   : > { %s855_s30 = sshll.u32 %s1383_s29, 3  ;;  %v351_v15 = vld [vmem:[%s1372_s1] sm:$0x3]  ;;  %561 = vmatpush.bf16.msra.mxu1 %v1003_v14  ;;  %v1002_v16 = vld [vmem:[#allocation4 + $0x30] sm:$0xff]  ;;  %v1001_v20 = vld [vmem:[#allocation4 + $0x28] sm:$0xff] }
  0x1f   : > { %s341_s26 = scalar_lea.vmem %s1371_s0, %s855_s30  ;;  %v352_v17 = vunpack.c.l.bf16 %v351_v15  ;;  %v1000_v23 = vld [vmem:[#allocation4 + $0x20] sm:$0xff]  ;;  %v999_v52 = vld [vmem:[#allocation4 + $0x18] sm:$0xff]  ;;  %v998_v53 = vld [vmem:[#allocation4 + $0x10] sm:$0xff]  ;;  %s347_s28 = scalar_lea.vmem %s1378_s7, %s855_s30 }
  0x20   : > { %v349_v3 = vld [vmem:[%s341_s26] sm:$0xff]  ;;  %v350_v6 = vld [vmem:[%s341_s26 + $0x8] sm:$0xff]  ;;  %479 = vmatpush.bf16.msra.mxu0 %v994_v5  ;;  %v1011_v56 = vld [vmem:[#allocation6 + $0x38] sm:$0xff] }
  0x21   : > { %371 = vperm.xlu1 %1076, %v349_v3   ;;  %356 = vperm.xlu0 %1075, %v349_v3   ;;  %v364_v21 = vperm.slane %v352_v17, 0  ;;  %v1080_v24 = vld [vmem:[%s1377_s6] ss:$0 sm:$0xff]  ;;  %v378_v26 = vperm.slane %v352_v17, 1  ;;  %v391_v30 = vperm.slane %v352_v17, 2  ;;  %v404_v39 = vperm.slane %v352_v17, 3 }
  0x22   : > { %384 = vperm.xlu2 %1077, %v349_v3   ;;  %562 = vmatpush.bf16.msra.mxu1 %v1002_v16  ;;  %v997_v54 = vld [vmem:[#allocation4 + $0x8] sm:$0xff]  ;;  %v996_v55 = vld [vmem:[#allocation4] sm:$0xff]  ;;  %v1010_v57 = vld [vmem:[#allocation6 + $0x30] sm:$0xff] }
  0x23   : > { %644 = vmatpush.bf16.msra.mxu2 %v1011_v56  ;;  %v1009_v58 = vld [vmem:[#allocation6 + $0x28] sm:$0xff]  ;;  %v1008_v59 = vld [vmem:[#allocation6 + $0x20] sm:$0xff]  ;;  %v1007_v4 = vld [vmem:[#allocation6 + $0x18] sm:$0xff] }
  0x24   : > { %480 = vmatpush.bf16.msra.mxu0 %v993_v8  ;;  %v1081_v61 = vld [vmem:[%s1377_s6 + $0x1] ss:$0 sm:$0xff]  ;;  %v1006_v5 = vld [vmem:[#allocation6 + $0x10] sm:$0xff]  ;;  %v1019_v8 = vld [vmem:[#allocation7 + $0x38] sm:$0xff] }
  0x25   : > { %727 = vmatpush.bf16.msra.mxu3 %v1019_v8 }
  0x26   : > { %563 = vmatpush.bf16.msra.mxu1 %v1001_v20  ;;  %v1015_v20 = vld [vmem:[#allocation7 + $0x18] sm:$0xff] }
  0x27   : > { %645 = vmatpush.bf16.msra.mxu2 %v1010_v57 }
  0x28   : > { %481 = vmatpush.bf16.msra.mxu0 %v992_v9  ;;  %v1018_v9 = vld [vmem:[#allocation7 + $0x30] sm:$0xff] }
  0x29   : > { %375 = vperm.xlu1 %1076, %v350_v6   ;;  %361 = vperm.xlu0 %1075, %v350_v6  }
  0x2a   : > { %388 = vperm.xlu2 %1077, %v350_v6   ;;  %564 = vmatpush.bf16.msra.mxu1 %v1000_v23  ;;  %v1012_v23 = vld [vmem:[#allocation7] sm:$0xff] }
  0x2b   : > { %646 = vmatpush.bf16.msra.mxu2 %v1009_v58  ;;  %728 = vmatpush.bf16.msra.mxu3 %v1018_v9 }
  0x2c   : > { %482 = vmatpush.bf16.msra.mxu0 %v991_v10  ;;  %v1017_v10 = vld [vmem:[#allocation7 + $0x28] sm:$0xff] }
  0x2e   : > { %565 = vmatpush.bf16.msra.mxu1 %v999_v52 }
  0x2f   : > { %647 = vmatpush.bf16.msra.mxu2 %v1008_v59  ;;  %729 = vmatpush.bf16.msra.mxu3 %v1017_v10 }
  0x30   : > { %483 = vmatpush.bf16.msra.mxu0 %v990_v11  ;;  %v1016_v11 = vld [vmem:[#allocation7 + $0x20] sm:$0xff] }
  0x31   : > { %1079 = vset.pattern.permute.xlu1 %v1234_v7  ;;  %1078 = vset.pattern.permute.xlu0 %v1234_v7  ;;  %v1004_v7 = vld [vmem:[#allocation6] sm:$0xff] }
  0x32   : > { %401 = vperm.xlu1 %1079, %v350_v6   ;;  %397 = vperm.xlu0 %1078, %v349_v3   ;;  %v1005_v6 = vld [vmem:[#allocation6 + $0x8] sm:$0xff] }
  0x33   : > { %566 = vmatpush.bf16.msra.mxu1 %v998_v53  ;;  %648 = vmatpush.bf16.msra.mxu2 %v1007_v4 }
  0x34   : > { %484 = vmatpush.bf16.msra.mxu0 %v989_v12  ;;  %730 = vmatpush.bf16.msra.mxu3 %v1016_v11 }
  0x37   : > { %567 = vmatpush.bf16.msra.mxu1 %v997_v54  ;;  %649 = vmatpush.bf16.msra.mxu2 %v1006_v5 }
  0x38   : > { %485 = vmatpush.bf16.msra.mxu0 %v988_v13  ;;  %v1082_v13 = vld [vmem:[%s1377_s6 + $0x2] ss:$0 sm:$0xff]  ;;  %731 = vmatpush.bf16.msra.mxu3 %v1015_v20 }
  0x3b   : > { %568 = vmatpush.bf16.msra.mxu1 %v996_v55  ;;  %650 = vmatpush.bf16.msra.mxu2 %v1005_v6 }
  0x3f   : > { %651 = vmatpush.bf16.msra.mxu2 %v1004_v7 }
  0x7c   : > { %v385_v22 = vpop.permute.xlu2 %384 }
  0x7d   : > { %v392_v36 = vmul.f32 %v391_v30, %v385_v22  ;;  %v1013_v22 = vld [vmem:[#allocation7 + $0x8] sm:$0xff] }
  0x84   : > { %v389_v35 = vpop.permute.xlu2 %388 }
  0x85   : > { %v393_v40 = vmul.f32 %v391_v30, %v389_v35 }
  0x93   : > { %v372_v18 = vpop.permute.xlu1 %371  ;;  %v357_v19 = vpop.permute.xlu0 %356 }
  0x94   : > { %v365_v25 = vmul.f32 %v364_v21, %v357_v19  ;;  %v379_v33 = vmul.f32 %v378_v26, %v372_v18 }
  0x96   : > { %v368_v31 = vadd.f32 %v1080_v24, %v365_v25  ;;  %v1083_v25 = vld [vmem:[%s1377_s6 + $0x3] ss:$0 sm:$0xff] }
  0x98   : > { %v381_v37 = vadd.f32 %v379_v33, %v368_v31 }
  0x9a   : > { %v394_v45 = vadd.f32 %v392_v36, %v381_v37 }
  0x9b   : > { %v376_v27 = vpop.permute.xlu1 %375  ;;  %v362_v28 = vpop.permute.xlu0 %361 }
  0x9c   : > { %v366_v29 = vmul.f32 %v364_v21, %v362_v28  ;;  %v380_v34 = vmul.f32 %v378_v26, %v376_v27  ;;  %v1014_v21 = vld [vmem:[#allocation7 + $0x10] sm:$0xff] }
  0x9d   : > { %732 = vmatpush.bf16.msra.mxu3 %v1014_v21 }
  0x9e   : > { %v369_v32 = vadd.f32 %v1080_v24, %v366_v29 }
  0xa0   : > { %v382_v38 = vadd.f32 %v380_v34, %v369_v32  ;;  %v1084_v32 = vld [vmem:[%s1377_s6 + $0x4] ss:$0 sm:$0xff] }
  0xa1   : > { %733 = vmatpush.bf16.msra.mxu3 %v1013_v22 }
  0xa2   : > { %v395_v43 = vadd.f32 %v393_v40, %v382_v38 }
  0xa4   : > { %v402_v41 = vpop.permute.xlu1 %401  ;;  %v398_v42 = vpop.permute.xlu0 %397 }
  0xa5   : > { %v406_v44 = vmul.f32 %v404_v39, %v402_v41  ;;  %v405_v46 = vmul.f32 %v404_v39, %v398_v42  ;;  %734 = vmatpush.bf16.msra.mxu3 %v1012_v23 }
  0xa7   : > { %v408_v47 = vadd.f32 %v406_v44, %v395_v43  ;;  %v407_v48 = vadd.f32 %v405_v46, %v394_v45 }
  0xa9   : > { %v410_v49 = vmax.f32 %v408_v47, 0.0  ;;  %v409_v50 = vmax.f32 %v407_v48, 0.0 }
  0xab   : > { %v411_v51 = vpack.c.bf16 %v410_v49, %v409_v50 }
  0xad   : > { %486 = vmatmul.bf16.vlgmr.msra.gmra.mxu0 %v411_v51 }
 0x12a   : > { %v487_v60 = vpop.f32.mrf.mxu0 }
 0x12b   : > { %v488_v62 = vadd.f32 %v1081_v61, %v487_v60 }
 0x12d   : > { %v492_v1 = vmax.f32 %v488_v62, 0.0 }
 0x132   : > { %v489_v63 = vpop.f32.mrf.mxu0 }
 0x133   : > { %v490_v0 = vadd.f32 %v1081_v61, %v489_v63 }
 0x135   : > { %v493_v2 = vmax.f32 %v490_v0, 0.0 }
 0x137   : > { %v494_v3 = vpack.c.bf16 %v493_v2, %v492_v1 }
 0x139   : > { %569 = vmatmul.bf16.vlgmr.msra.gmra.mxu1 %v494_v3 }
 0x1b6   : > { %v570_v12 = vpop.f32.mrf.mxu1 }
 0x1b7   : > { %v571_v14 = vadd.f32 %v1082_v13, %v570_v12 }
 0x1b9   : > { %v575_v17 = vmax.f32 %v571_v14, 0.0 }
 0x1be   : > { %v572_v15 = vpop.f32.mrf.mxu1 }
 0x1bf   : > { %v573_v16 = vadd.f32 %v1082_v13, %v572_v15 }
 0x1c1   : > { %v576_v18 = vmax.f32 %v573_v16, 0.0 }
 0x1c3   : > { %v577_v19 = vpack.c.bf16 %v576_v18, %v575_v17 }
 0x1c5   : > { %652 = vmatmul.bf16.vlgmr.msra.gmra.mxu2 %v577_v19 }
 0x248   : > { %v653_v24 = vpop.f32.mrf.mxu2 }
 0x249   : > { %v654_v26 = vadd.f32 %v1083_v25, %v653_v24 }
 0x24b   : > { %v658_v29 = vmax.f32 %v654_v26, 0.0 }
 0x250   : > { %v655_v27 = vpop.f32.mrf.mxu2 }
 0x251   : > { %v656_v28 = vadd.f32 %v1083_v25, %v655_v27 }
 0x253   : > { %v659_v30 = vmax.f32 %v656_v28, 0.0 }
 0x255   : > { %v660_v31 = vpack.c.bf16 %v659_v30, %v658_v29 }
 0x257   : > { %735 = vmatmul.bf16.vlgmr.msra.gmra.mxu3 %v660_v31 }
 0x2da   : > { %v736_v33 = vpop.f32.mrf.mxu3 }
 0x2db   : > { %v737_v34 = vadd.f32 %v1084_v32, %v736_v33 }
 0x2dd   : > { %742 = vst.msk [vmem:[%s347_s28] sm:$0xff] %vm741_vm0, %v737_v34 }
 0x2e2   : > { %v738_v35 = vpop.f32.mrf.mxu3 }
 0x2e3   : > { %v739_v36 = vadd.f32 %v1084_v32, %v738_v35 }
 0x2e5   : > { %743 = vst.msk [vmem:[%s347_s28 + $0x8] sm:$0xff] %vm741_vm0, %v739_v36 }
 0x2e6 PF: > { %s20_s24 = sadd.s32 1, %s1223_s24  }
 0x2e7   : > { %p17_p7 = scmp.ge.s32.totalorder %s20_s24, 4  }
 0x2e9   :  { %19 = sbr.rel (!%p17_p7) target bundleno = 3 (0x3), region = 95 }
 0x2ee   :  { %766 = vsyncpa [#allocation3], 1 }
 0x2ef   :  { %768 = vsyncpa [#allocation3 + $0x1], 1 }
 0x2f0   :  { %769 = vsyncpa [#allocation5], 1 }
 0x2f1   :  { %770 = vsyncpa [#allocation8], 1 }

</bundles_post_ra>
